<compile_context>
chip_gen: v7x
topology: tpu7x:2x2x1
jax: 0.10.0
libtpu: 0.0.40
codegen_flags: <defaults>
</compile_context>

<pallas_src>
import functools

import jax
import jax.numpy as jnp
from jax import lax
from jax.experimental import pallas as pl
from jax.experimental.pallas import tpu as pltpu

_BLOCK_B = 128   # batch tile (sublane axis), multiple of 8
_BLOCK_O = 512   # out_dim tile (lane axis), multiple of 128


def _round_up(n, m):
    return ((n + m - 1) // m) * m


def dendrite_output_kernel(x_ref, w_ref, b_ref, o_ref):
    # x_ref: (TB, D, TO)  activations with the unit axis (TO) on lanes
    # w_ref: (D, TO)      active (block-diagonal) weights
    # b_ref: (1, TO)      bias
    # o_ref: (TB, TO)     lane-dense output tile
    x = x_ref[...].astype(jnp.float32)
    w = w_ref[...].astype(jnp.float32)            # broadcasts over the batch axis
    acc = jnp.sum(x * w, axis=1)                  # reduce over D dendrites -> (TB, TO)
    o_ref[...] = (acc + b_ref[...].astype(jnp.float32)).astype(o_ref.dtype)


@functools.partial(jax.jit, static_argnums=(3,))
def dendrite_output(x, weight, bias, dendrites_per_unit):
    """x: (B, out_dim*D), weight: (out_dim, out_dim*D), bias: (out_dim,)."""
    B, in_features = x.shape
    out_dim = weight.shape[0]
    D = dendrites_per_unit
    assert in_features == out_dim * D

    # Active (block-diagonal) weights: w_act[i, d] = weight[i, i*D + d].
    # (In a real deployment the compact form would be maintained directly / extracted
    #  once per weight update, not per forward call.)
    idx = jnp.arange(out_dim)
    w_act = weight.reshape(out_dim, out_dim, D)[idx, idx, :]        # (out_dim, D)
    w_t = w_act.T                                                   # (D, out_dim)

    # Layout plumbing (outside the kernel): unit axis -> lanes.
    x_t = x.reshape(B, out_dim, D).transpose(0, 2, 1)               # (B, D, out_dim)

    # Pad to lane-dense / tile-aligned shapes (padding weights & bias are zero,
    # so padded output columns are exactly zero and get sliced off).
    TO = min(_BLOCK_O, _round_up(out_dim, 128))                     # lane tile
    OP = _round_up(out_dim, TO)
    TB = min(_BLOCK_B, _round_up(B, 8))                             # sublane tile
    BP = _round_up(B, TB)

    x_p = jnp.pad(x_t, ((0, BP - B), (0, 0), (0, OP - out_dim)))
    w_p = jnp.pad(w_t, ((0, 0), (0, OP - out_dim)))
    b_p = jnp.pad(bias, (0, OP - out_dim)).reshape(1, OP)

    grid = (BP // TB, OP // TO)

    out = pl.pallas_call(
        dendrite_output_kernel,
        out_shape=jax.ShapeDtypeStruct((BP, OP), x.dtype),
        grid_spec=pltpu.PrefetchScalarGridSpec(
            num_scalar_prefetch=0,
            grid=grid,
            in_specs=[
                pl.BlockSpec((TB, D, TO), lambda i, j: (i, 0, j)),
                pl.BlockSpec((D, TO), lambda i, j: (0, j)),
                pl.BlockSpec((1, TO), lambda i, j: (0, j)),
            ],
            out_specs=pl.BlockSpec((TB, TO), lambda i, j: (i, j)),
        ),
        compiler_params=pltpu.CompilerParams(
            # Both grid axes are independent: pipelined double-buffering everywhere,
            # and the work shards across the 2 TensorCores on v7x.
            dimension_semantics=("parallel", "parallel")),
    )(x_p, w_p, b_p)

    return out[:B, :out_dim]


def make_dendrite_mask(out_dim, dendrites_per_unit):
    # mask[i, k] = 1.0 iff k // dendrites_per_unit == i  (reference check only)
    k = jnp.arange(out_dim * dendrites_per_unit)
    i = jnp.arange(out_dim)
    return (k[None, :] // dendrites_per_unit == i[:, None]).astype(jnp.float32)


def init_params(key, out_dim, dendrites_per_unit):
    # Deterministic stand-in for nn.init.kaiming_uniform_ (a=0, fan_in mode):
    # bound = sqrt(2) * sqrt(3 / fan_in); bias filled with 0.0 as in the module.
    in_features = out_dim * dendrites_per_unit
    bound = jnp.sqrt(2.0) * jnp.sqrt(3.0 / in_features)
    weight = jax.random.uniform(key, (out_dim, in_features),
                                minval=-bound, maxval=bound, dtype=jnp.float32)
    bias = jnp.zeros((out_dim,), dtype=jnp.float32)
    return weight, bias


if __name__ == "__main__":
    out_dim = 32
    dendrites_per_unit = 4
    batch = 8
    in_features = out_dim * dendrites_per_unit  # 128

    key = jax.random.PRNGKey(0)
    k_w, k_x = jax.random.split(key)

    weight, bias = init_params(k_w, out_dim, dendrites_per_unit)
    x = jax.random.normal(k_x, (batch, in_features), dtype=jnp.float32)

    out = dendrite_output(x, weight, bias, dendrites_per_unit)
    out = jax.block_until_ready(out)

    # Reference: the full PyTorch formulation (dense masked matmul) in f32.
    mask = make_dendrite_mask(out_dim, dendrites_per_unit)
    ref = jnp.dot(x, (weight * mask).T, precision=lax.Precision.HIGHEST) + bias

    assert out.shape == (batch, out_dim)
    assert jnp.allclose(out, ref, atol=1e-5, rtol=1e-5)

    print("KERNEL_OK")
</pallas_src>

<mosaic_0001>
module attributes {stable_mosaic.version = 11 : i64} {
  func.func @dendrite_output_kernel(%arg0: i32, %arg1: i32, %arg2: memref<8x4x128xf32, #tpu.memory_space<vmem>>, %arg3: memref<4x128xf32, #tpu.memory_space<vmem>>, %arg4: memref<1x128xf32, #tpu.memory_space<vmem>>, %arg5: memref<8x128xf32, #tpu.memory_space<vmem>>) attributes {dimension_semantics = [#tpu.dimension_semantics<parallel>, #tpu.dimension_semantics<parallel>], iteration_bounds = array<i64: 1, 1>, scalar_prefetch = 0 : i64, scratch_operands = 0 : i64, tpu.core_type = #tpu.core_type<tc>, window_params = [{transform_indices = @transform_0, window_bounds = array<i64: 8, 4, 128>}, {transform_indices = @transform_1, window_bounds = array<i64: 4, 128>}, {transform_indices = @transform_2, window_bounds = array<i64: 1, 128>}, {transform_indices = @transform_3, window_bounds = array<i64: 8, 128>}]} {
    %c0 = arith.constant 0 : index
    %c0_0 = arith.constant 0 : index
    %c0_1 = arith.constant 0 : index
    %0 = vector.load %arg2[%c0, %c0_0, %c0_1] : memref<8x4x128xf32, #tpu.memory_space<vmem>>, vector<8x4x128xf32>
    %c0_2 = arith.constant 0 : index
    %c0_3 = arith.constant 0 : index
    %1 = vector.load %arg3[%c0_2, %c0_3] : memref<4x128xf32, #tpu.memory_space<vmem>>, vector<4x128xf32>
    %2 = vector.shape_cast %1 : vector<4x128xf32> to vector<1x4x128xf32>
    %3 = vector.broadcast %2 : vector<1x4x128xf32> to vector<8x4x128xf32>
    %4 = arith.mulf %0, %3 : vector<8x4x128xf32>
    %cst = arith.constant dense<0.000000e+00> : vector<8x128xf32>
    %5 = vector.multi_reduction <add>, %4, %cst [1] : vector<8x4x128xf32> to vector<8x128xf32>
    %c0_4 = arith.constant 0 : index
    %c0_5 = arith.constant 0 : index
    %6 = vector.load %arg4[%c0_4, %c0_5] : memref<1x128xf32, #tpu.memory_space<vmem>>, vector<1x128xf32>
    %7 = vector.broadcast %6 : vector<1x128xf32> to vector<8x128xf32>
    %8 = arith.addf %5, %7 : vector<8x128xf32>
    %c0_6 = arith.constant 0 : index
    %c0_7 = arith.constant 0 : index
    %9 = vector.load %arg5[%c0_6, %c0_7] : memref<8x128xf32, #tpu.memory_space<vmem>>, vector<8x128xf32>
    tpu.vector_store %arg5[%c0_6, %c0_7], %8 {strides = array<i32>} : memref<8x128xf32, #tpu.memory_space<vmem>>, vector<8x128xf32>,
    return
  }
  func.func @transform_0(%arg0: i32, %arg1: i32) -> (i32, i32, i32) {
    %c0_i32 = arith.constant 0 : i32
    %c0_i32_0 = arith.constant 0 : i32
    return %arg0, %c0_i32, %arg1 : i32, i32, i32
  }
  func.func @transform_1(%arg0: i32, %arg1: i32) -> (i32, i32) {
    %c0_i32 = arith.constant 0 : i32
    %c0_i32_0 = arith.constant 0 : i32
    return %c0_i32, %arg1 : i32, i32
  }
  func.func @transform_2(%arg0: i32, %arg1: i32) -> (i32, i32) {
    %c0_i32 = arith.constant 0 : i32
    %c0_i32_0 = arith.constant 0 : i32
    return %c0_i32, %arg1 : i32, i32
  }
  func.func @transform_3(%arg0: i32, %arg1: i32) -> (i32, i32) {
    %c0_i32 = arith.constant 0 : i32
    return %arg0, %arg1 : i32, i32
  }
}

</mosaic_0001>

<bundles_post_ra>
// kernel: dendrite_output.1
= control target key start
LH: loop header
LB: loop body
LE: loop exit
PB: predicated region body
PF: predicated region fallthrough
CT: control target
= control target key end

     0   :  { %s240_s0 = inlined_call_operand.vmem [shape: f32[8,4,128], index: 0, kind: input, shape index: {}]   ;;  %s241_s1 = inlined_call_operand.vmem [shape: f32[4,128], index: 1, kind: input, shape index: {}]   ;;  %s242_s2 = inlined_call_operand.vmem [shape: f32[1,128], index: 2, kind: input, shape index: {}]   ;;  %s243_s3 = inlined_call_operand.hbm [shape: f32[8,128], index: 3, kind: output, shape index: {}]  }
   0x1   :  { %v15_v0 = vld [vmem:[%s240_s0] sm:$0xf]  ;;  %v16_v1 = vld [vmem:[%s240_s0 + $0x4] sm:$0xf]  ;;  %v17_v2 = vld [vmem:[%s240_s0 + $0x8] sm:$0xf] }
   0x2   :  { %v18_v3 = vld [vmem:[%s240_s0 + $0xc] sm:$0xf]  ;;  %v19_v4 = vld [vmem:[%s240_s0 + $0x10] sm:$0xf]  ;;  %v20_v5 = vld [vmem:[%s240_s0 + $0x14] sm:$0xf] }
   0x3   :  { %v21_v6 = vld [vmem:[%s240_s0 + $0x18] sm:$0xf]  ;;  %v22_v7 = vld [vmem:[%s240_s0 + $0x1c] sm:$0xf]  ;;  %v23_v8 = vld [vmem:[%s241_s1] sm:$0xf] }
   0x4   :  { %v24_v9 = vmul.f32 %v23_v8, %v15_v0  ;;  %v25_v10 = vmul.f32 %v23_v8, %v16_v1  ;;  %v26_v11 = vmul.f32 %v23_v8, %v17_v2  ;;  %v27_v12 = vmul.f32 %v23_v8, %v18_v3 }
   0x5   :  { %8 = vsyncpa [#allocation3], 0  ;;  %v28_v13 = vmul.f32 %v23_v8, %v19_v4  ;;  %v29_v14 = vmul.f32 %v23_v8, %v20_v5  ;;  %v30_v15 = vmul.f32 %v23_v8, %v21_v6  ;;  %v31_v16 = vmul.f32 %v23_v8, %v22_v7  ;;  %v149_v61 = vld [vmem:[%s242_s2] ss:$0 sm:$0xff]  ;;  %s175_s2 = smov [#allocation2]  }
   0x6   :  { %vm32_vm0 = vcmask 1043456   ;;  %vm113_vm1 = vcmask 1041409   ;;  %vm116_vm2 = vcmask 1042434   ;;  %vm119_vm3 = vcmask 1043459   ;;  %s141_s30 = sshll.u32 %s175_s2, 4  ;;  %s142_s30 = int_to_ptr.vmem [resolvable:$true] %s141_s30 }
   0x7   :  { %v33_v17 = vsel %vm32_vm0, %v24_v9, 0.0  ;;  %v40_v18 = vsel %vm32_vm0, %v25_v10, 0.0  ;;  %v47_v19 = vsel %vm32_vm0, %v26_v11, 0.0  ;;  %v54_v20 = vsel %vm32_vm0, %v27_v12, 0.0  ;;  %s151_s4 = scalar_lea.vmem %s142_s30, 128  ;;  %p156_p1 = scmp.lt.s32.totalorder %s142_s30, %s142_s30 }
   0x8   :  { %v34_v21 = vrot.slane %v33_v17, 4  ;;  %v41_v22 = vrot.slane %v40_v18, 4  ;;  %v48_v23 = vrot.slane %v47_v19, 4  ;;  %v55_v24 = vrot.slane %v54_v20, 4  ;;  %p152_p0 = scmp.ne.s32.totalorder %s142_s30, %s151_s4  ;;  %p157_p2 = scmp.lt.s32.totalorder %s151_s4, %s151_s4 }
   0x9   :  { %v61_v25 = vsel %vm32_vm0, %v28_v13, 0.0  ;;  %v68_v26 = vsel %vm32_vm0, %v29_v14, 0.0  ;;  %v75_v27 = vsel %vm32_vm0, %v30_v15, 0.0  ;;  %v82_v28 = vsel %vm32_vm0, %v31_v16, 0.0 }
   0xa   :  { %v35_v29 = vadd.f32 %v34_v21, %v33_v17  ;;  %v42_v30 = vadd.f32 %v41_v22, %v40_v18  ;;  %v49_v31 = vadd.f32 %v48_v23, %v47_v19  ;;  %v56_v32 = vadd.f32 %v55_v24, %v54_v20  ;;  %p158_p3 = por %p157_p2, %p156_p1 }
   0xb   :  { %v62_v33 = vrot.slane %v61_v25, 4  ;;  %v69_v34 = vrot.slane %v68_v26, 4  ;;  %v76_v35 = vrot.slane %v75_v27, 4  ;;  %v83_v36 = vrot.slane %v82_v28, 4 }
   0xc   :  { %v36_v37 = vrot.slane %v35_v29, 2  ;;  %v43_v38 = vrot.slane %v42_v30, 2  ;;  %v50_v39 = vrot.slane %v49_v31, 2  ;;  %v57_v40 = vrot.slane %v56_v32, 2  ;;  %p159_p4 = pnand %p158_p3, %p152_p0 }
   0xd   :  { %v63_v41 = vadd.f32 %v62_v33, %v61_v25  ;;  %v70_v42 = vadd.f32 %v69_v34, %v68_v26  ;;  %v77_v43 = vadd.f32 %v76_v35, %v75_v27  ;;  %v84_v44 = vadd.f32 %v83_v36, %v82_v28 }
   0xe   :  { %v37_v45 = vadd.f32 %v36_v37, %v35_v29  ;;  %v44_v46 = vadd.f32 %v43_v38, %v42_v30  ;;  %v51_v47 = vadd.f32 %v50_v39, %v49_v31  ;;  %v58_v48 = vadd.f32 %v57_v40, %v56_v32 }
   0xf   :  { %v64_v49 = vrot.slane %v63_v41, 2  ;;  %v71_v50 = vrot.slane %v70_v42, 2  ;;  %v78_v51 = vrot.slane %v77_v43, 2  ;;  %v85_v52 = vrot.slane %v84_v44, 2 }
  0x10   :  { %v38_v53 = vrot.slane %v37_v45, 1  ;;  %v45_v54 = vrot.slane %v44_v46, 1  ;;  %v52_v55 = vrot.slane %v51_v47, 1  ;;  %v59_v56 = vrot.slane %v58_v48, 1 }
  0x11   :  { %v65_v57 = vadd.f32 %v64_v49, %v63_v41  ;;  %v72_v58 = vadd.f32 %v71_v50, %v70_v42  ;;  %v79_v59 = vadd.f32 %v78_v51, %v77_v43  ;;  %v86_v60 = vadd.f32 %v85_v52, %v84_v44 }
  0x12   :  { %v39_v62 = vadd.f32 %v38_v53, %v37_v45  ;;  %v46_v63 = vadd.f32 %v45_v54, %v44_v46  ;;  %v53_v0 = vadd.f32 %v52_v55, %v51_v47  ;;  %v60_v1 = vadd.f32 %v59_v56, %v58_v48 }
  0x13   :  { %v66_v2 = vrot.slane %v65_v57, 1  ;;  %v73_v3 = vrot.slane %v72_v58, 1  ;;  %v80_v4 = vrot.slane %v79_v59, 1  ;;  %v87_v5 = vrot.slane %v86_v60, 1 }
  0x14   :  { %v96_v6 = vadd.f32 %v149_v61, %v39_v62  ;;  %v97_v7 = vadd.f32 %v149_v61, %v46_v63  ;;  %v98_v8 = vadd.f32 %v149_v61, %v53_v0  ;;  %v99_v9 = vadd.f32 %v149_v61, %v60_v1 }
  0x15   :  { %v67_v10 = vadd.f32 %v66_v2, %v65_v57  ;;  %v74_v11 = vadd.f32 %v73_v3, %v72_v58  ;;  %v81_v12 = vadd.f32 %v80_v4, %v79_v59  ;;  %v88_v13 = vadd.f32 %v87_v5, %v86_v60 }
  0x16   :  { %v112_v14 = vrot.slane %v97_v7, 7  ;;  %v115_v15 = vrot.slane %v98_v8, 6  ;;  %v118_v16 = vrot.slane %v99_v9, 5  ;;  %vm122_vm4 = vcmask 1044484  }
  0x17   :  { %v100_v17 = vadd.f32 %v149_v61, %v67_v10  ;;  %v101_v18 = vadd.f32 %v149_v61, %v74_v11  ;;  %v102_v19 = vadd.f32 %v149_v61, %v81_v12  ;;  %v103_v20 = vadd.f32 %v149_v61, %v88_v13 }
  0x18   :  { %v114_v21 = vsel %vm113_vm1, %v112_v14, %v96_v6  ;;  %vm125_vm5 = vcmask 1045509   ;;  %vm128_vm6 = vcmask 1046534   ;;  %vm131_vm7 = vcmask 1047559  }
  0x19   :  { %v117_v22 = vsel %vm116_vm2, %v115_v15, %v114_v21  ;;  %v121_v23 = vrot.slane %v100_v17, 4  ;;  %v124_v24 = vrot.slane %v101_v18, 3  ;;  %v127_v25 = vrot.slane %v102_v19, 2 }
  0x1a   :  { %v120_v26 = vsel %vm119_vm3, %v118_v16, %v117_v22  ;;  %v130_v27 = vrot.slane %v103_v20, 1 }
  0x1b   :  { %v123_v28 = vsel %vm122_vm4, %v121_v23, %v120_v26 }
  0x1c   :  { %v126_v29 = vsel %vm125_vm5, %v124_v24, %v123_v28 }
  0x1d   :  { %v129_v30 = vsel %vm128_vm6, %v127_v25, %v126_v29 }
  0x1e   :  { %v132_v31 = vsel %vm131_vm7, %v130_v27, %v129_v30 }
  0x1f   :  { %134 = vst [vmem:[#allocation2] sm:$0xff] %v132_v31 }
  0x20   :  { %162 = shalt.err (!%p159_p4)
}
  0x21   :  { %s163_s7 = scalar_lea.hbm %s243_s3, 128 }
  0x22   :  { %p164_p5 = scmp.ne.s32.totalorder %s243_s3, %s163_s7  ;;  %p167_p6 = scmp.lt.u32.totalorder %s163_s7, %s243_s3 }
  0x24   :  { %p169_p7 = pnand %p167_p6, %p164_p5 }
  0x26   :  { %172 = shalt.err (!%p169_p7)
}
  0x27   :  { %144 = dma.vmem_to_hbm [thread:$0]  %s142_s30, 128, %s243_s3, [#allocation3]  }
  0x28   :  { %173 = dma.done.wait [#allocation3], 128  }
  0x29   :  { %174 = vsyncadd [#allocation3], 4294967168 }
  0x2a   :  { %148 = vsyncpa [#allocation3], 1 }

</bundles_post_ra>
